<compile_context>
chip_gen: v6e
topology: v6e:2x2x1
jax: 0.10.0
libtpu: 0.0.40
codegen_flags: <defaults>
</compile_context>

<pallas_src>
import math
import functools
import numpy as np
import jax
import jax.numpy as jnp
from jax.experimental import pallas as pl
from jax.experimental.pallas import tpu as pltpu


def hashing_kernel(xt_ref, wt_ref, bt_ref, code_ref, score_ref, *,
                   num_table, code_length):
    # xt_ref: (D, tb) f32     wt_ref: (out_dim, D) f32     bt_ref: (out_dim, 1) f32
    # code_ref: (num_table, tb) i32   score_ref: (num_table, tb) f32
    z = jnp.dot(wt_ref[...], xt_ref[...],
                preferred_element_type=jnp.float32,
                precision=jax.lax.Precision.HIGHEST)            # (out_dim, tb) f32
    z = z + bt_ref[...]                                          # lane-broadcast bias

    t = jnp.tanh(jnp.abs(z))                                     # single EUP pass
    bits = (z > 0).astype(jnp.int32)

    # Rows are bit-major (row j = bit j//num_table of table j%num_table), so each bit k
    # is one contiguous (num_table, tb) sublane slab -> pure VPU adds / multiplies.
    code = bits[0:num_table]
    score = t[0:num_table]
    for k in range(1, code_length):
        sl = slice(k * num_table, (k + 1) * num_table)
        code = code + bits[sl] * (1 << k)
        score = score * t[sl]

    code_ref[...] = code
    score_ref[...] = score


def _fused_projection(weight, bias, *, in_dim, padded, out_dim, num_table,
                      code_length, decay_coeff):
    """Fold the 4 BH4 rounds, num_repeat tiling, decay residual, [:, :out_dim] slice and
    the bit-major output permutation into one (out_dim, in_dim) matrix + permuted bias."""
    num_repeat, _, num_block, _, _ = weight.shape
    # unnormalized Walsh-Hadamard matrix (Sylvester construction)
    hm = np.array([[1.0]], np.float32)
    while hm.shape[0] < padded:
        hm = np.block([[hm, hm], [hm, -hm]])
    hmat = jnp.asarray(hm)
    P = jax.lax.Precision.HIGHEST
    eye = jnp.eye(padded, dtype=jnp.float32)
    cols = []
    for r in range(num_repeat):
        a = eye
        for i in range(4):
            bd = jax.scipy.linalg.block_diag(
                *[weight[r, i, n] for n in range(num_block)])
            a = jnp.dot(a, jnp.dot(bd, hmat, precision=P), precision=P)
        cols.append(decay_coeff * a + (1.0 - decay_coeff) * eye)
    w_full = jnp.concatenate(cols, axis=1)[:, :out_dim]          # (padded, out_dim)

    # bit-major permutation: new row j <- old output column t*code_length + k,
    # with j = k*num_table + t.
    perm = np.array([(j % num_table) * code_length + (j // num_table)
                     for j in range(out_dim)], dtype=np.int32)
    # x's zero-padding columns contribute nothing -> keep only the first in_dim rows.
    wt = w_full[:in_dim][:, perm].T.astype(jnp.float32)          # (out_dim, in_dim)
    bt = bias.astype(jnp.float32)[perm].reshape(out_dim, 1)
    return wt, bt


def hashing_forward(x, weight, bias, *, num_table, code_length, block_size,
                    decay_coeff=0.7, batch_tile=None):
    B, D = x.shape
    padded = int(2 ** math.ceil(math.log2(D)))
    out_dim = num_table * code_length
    num_repeat = max(1, int(math.ceil(out_dim / padded)))
    num_block = padded // block_size
    assert weight.shape == (num_repeat, 4, num_block, block_size, block_size)
    assert code_length <= 30                   # code accumulated in int32

    wt, bt = _fused_projection(weight, bias, in_dim=D, padded=padded,
                               out_dim=out_dim, num_table=num_table,
                               code_length=code_length, decay_coeff=decay_coeff)
    xt = x.astype(jnp.float32).T               # (D, B): batch on lanes

    # Tile choice: >= 2 'parallel' grid steps when B allows (both v7x TensorCores busy);
    # otherwise one full tile (best on single-TC v5e/v6e; per-step data is only a few KiB).
    if batch_tile is not None:
        tb = batch_tile
    elif B % 256 == 0:
        tb = max(128, (min(1024, B // 2) // 128) * 128)
    else:
        tb = B
    assert B % tb == 0 and (tb == B or tb % 128 == 0)

    kernel = functools.partial(hashing_kernel, num_table=num_table,
                               code_length=code_length)

    code_t, score_t = pl.pallas_call(
        kernel,
        out_shape=(jax.ShapeDtypeStruct((num_table, B), jnp.int32),
                   jax.ShapeDtypeStruct((num_table, B), jnp.float32)),
        grid=(B // tb,),
        in_specs=[
            pl.BlockSpec((D, tb), lambda i: (0, i)),             # x^T batch tile
            pl.BlockSpec((out_dim, D), lambda i: (0, 0)),        # fused weight (invariant)
            pl.BlockSpec((out_dim, 1), lambda i: (0, 0)),        # permuted bias (invariant)
        ],
        out_specs=(pl.BlockSpec((num_table, tb), lambda i: (0, i)),
                   pl.BlockSpec((num_table, tb), lambda i: (0, i))),
        compiler_params=pltpu.CompilerParams(
            dimension_semantics=("parallel",)),
    )(xt, wt, bt)

    return code_t.T, score_t.T                 # (B, num_table) each


def reference_forward(x, weight, bias, num_table, code_length, block_size, decay_coeff=0.7):
    """Pure-JAX reference of the original module semantics (f32, HIGHEST precision)."""
    B, D = x.shape
    padded = int(2 ** math.ceil(math.log2(D)))
    out_dim = num_table * code_length
    num_repeat, _, num_block, bs, _ = weight.shape
    if D < padded:
        x = jnp.concatenate([x, jnp.zeros((B, padded - D), x.dtype)], axis=-1)
    hm = np.array([[1.0]], np.float32)
    while hm.shape[0] < padded:
        hm = np.block([[hm, hm], [hm, -hm]])
    hmat = jnp.asarray(hm)
    P = jax.lax.Precision.HIGHEST
    reps = []
    for r in range(num_repeat):
        h = x
        for i in range(4):
            hb = h.reshape(B, num_block, bs)
            hb = jnp.einsum('bnd,nde->bne', hb, weight[r, i], precision=P)
            h = jnp.dot(hb.reshape(B, padded), hmat, precision=P)
        reps.append(h)
    bh4_out = jnp.concatenate(reps, axis=-1)
    x_rep = jnp.tile(x, (1, num_repeat))
    y = decay_coeff * bh4_out + (1 - decay_coeff) * x_rep
    z = y[:, :out_dim] + bias[None, :]
    z3 = z.reshape(B, num_table, code_length)
    bits = (z3 > 0).astype(jnp.int32)
    pow2 = (2 ** jnp.arange(code_length)).astype(jnp.int32)
    code = jnp.sum(bits * pow2[None, None, :], axis=-1).astype(jnp.int32)
    score = jnp.prod(jnp.tanh(jnp.abs(z3)), axis=-1)
    return code, score


if __name__ == "__main__":
    # config consistent with the module: hidden=32, 8 tables of size 16 -> 4 bits/table
    hidden_size = 32
    num_table = 8
    table_size = 16
    block_size = 8
    code_length = int(math.log2(table_size))       # 4
    total_dim = num_table * code_length            # 32
    B = 256                                        # e.g. batch 8 x seq 32, flattened

    padded = int(2 ** math.ceil(math.log2(hidden_size)))
    num_repeat = max(1, int(math.ceil(total_dim / padded)))
    num_block = padded // block_size
    coeff = math.sqrt(block_size * padded)

    key = jax.random.PRNGKey(0)
    kx, kw = jax.random.split(key)
    x = jax.random.normal(kx, (B, hidden_size), jnp.float32)
    weight = jax.random.normal(
        kw, (num_repeat, 4, num_block, block_size, block_size), jnp.float32) / coeff
    bias = jnp.zeros((total_dim,), jnp.float32)

    code, score = hashing_forward(
        x, weight, bias, num_table=num_table, code_length=code_length,
        block_size=block_size)
    jax.block_until_ready((code, score))

    code_ref, score_ref = reference_forward(
        x, weight, bias, num_table, code_length, block_size)
    code_np, score_np = np.asarray(code), np.asarray(score)
    code_ref_np, score_ref_np = np.asarray(code_ref), np.asarray(score_ref)

    # Fused-HIGHEST matmul vs. the sequential f32 reference differ only by ~1e-6 relative
    # rounding; code bits can flip only for |z| at that scale, so require near-exact match.
    code_match = np.mean(code_np == code_ref_np)
    assert code_match >= 0.99, f"code mismatch fraction too high: {1 - code_match}"
    score_close = np.mean(np.abs(score_np - score_ref_np)
                          <= 1e-3 + 1e-2 * np.abs(score_ref_np))
    assert score_close >= 0.99, f"score close fraction too low: {score_close}"
    assert np.all(np.isfinite(score_np))

    print("KERNEL_OK")
</pallas_src>

<mosaic_0001>
module attributes {stable_mosaic.version = 11 : i64} {
  func.func @hashing_kernel(%arg0: i32, %arg1: memref<32x128xf32, #tpu.memory_space<vmem>>, %arg2: memref<32x32xf32, #tpu.memory_space<vmem>>, %arg3: memref<32x1xf32, #tpu.memory_space<vmem>>, %arg4: memref<8x128xi32, #tpu.memory_space<vmem>>, %arg5: memref<8x128xf32, #tpu.memory_space<vmem>>) attributes {dimension_semantics = [#tpu.dimension_semantics<parallel>], iteration_bounds = array<i64: 2>, scalar_prefetch = 0 : i64, scratch_operands = 0 : i64, tpu.core_type = #tpu.core_type<tc>, window_params = [{transform_indices = @transform_0, window_bounds = array<i64: 32, 128>}, {pipeline_mode = #tpu.pipeline_mode<synchronous>, transform_indices = @transform_1, window_bounds = array<i64: 32, 32>}, {pipeline_mode = #tpu.pipeline_mode<synchronous>, transform_indices = @transform_2, window_bounds = array<i64: 32, 1>}, {transform_indices = @transform_3, window_bounds = array<i64: 8, 128>}, {transform_indices = @transform_4, window_bounds = array<i64: 8, 128>}]} {
    %c0 = arith.constant 0 : index
    %c0_0 = arith.constant 0 : index
    %0 = vector.load %arg2[%c0, %c0_0] : memref<32x32xf32, #tpu.memory_space<vmem>>, vector<32x32xf32>
    %c0_1 = arith.constant 0 : index
    %c0_2 = arith.constant 0 : index
    %1 = vector.load %arg1[%c0_1, %c0_2] : memref<32x128xf32, #tpu.memory_space<vmem>>, vector<32x128xf32>
    %cst = arith.constant dense<0.000000e+00> : vector<32x128xf32>
    %2 = tpu.matmul %0, %1, %cst {dimension_numbers = #tpu.dot_dimension_numbers<[1], [0], [0], [1], [0, 0, 1, 1], [], []>, precision = #tpu.contract_precision<fp32>} : vector<32x32xf32>, vector<32x128xf32>, vector<32x128xf32> -> vector<32x128xf32>
    %c0_3 = arith.constant 0 : index
    %c0_4 = arith.constant 0 : index
    %3 = vector.load %arg3[%c0_3, %c0_4] : memref<32x1xf32, #tpu.memory_space<vmem>>, vector<32x1xf32>
    %4 = vector.broadcast %3 : vector<32x1xf32> to vector<32x128xf32>
    %5 = arith.addf %2, %4 : vector<32x128xf32>
    %6 = math.absf %5 : vector<32x128xf32>
    %7 = math.tanh %6 : vector<32x128xf32>
    %cst_5 = arith.constant 0.000000e+00 : f32
    %8 = vector.broadcast %cst_5 : f32 to vector<32x128xf32>
    %9 = arith.cmpf ogt, %5, %8 : vector<32x128xf32>
    %10 = arith.extui %9 : vector<32x128xi1> to vector<32x128xi32>
    %11 = vector.extract_strided_slice %10 {offsets = [0, 0], sizes = [8, 128], strides = [1, 1]} : vector<32x128xi32> to vector<8x128xi32>
    %12 = vector.extract_strided_slice %7 {offsets = [0, 0], sizes = [8, 128], strides = [1, 1]} : vector<32x128xf32> to vector<8x128xf32>
    %13 = vector.extract_strided_slice %10 {offsets = [8, 0], sizes = [8, 128], strides = [1, 1]} : vector<32x128xi32> to vector<8x128xi32>
    %c2_i32 = arith.constant 2 : i32
    %14 = vector.broadcast %c2_i32 : i32 to vector<8x128xi32>
    %15 = arith.muli %13, %14 : vector<8x128xi32>
    %16 = arith.addi %11, %15 : vector<8x128xi32>
    %17 = vector.extract_strided_slice %7 {offsets = [8, 0], sizes = [8, 128], strides = [1, 1]} : vector<32x128xf32> to vector<8x128xf32>
    %18 = arith.mulf %12, %17 : vector<8x128xf32>
    %19 = vector.extract_strided_slice %10 {offsets = [16, 0], sizes = [8, 128], strides = [1, 1]} : vector<32x128xi32> to vector<8x128xi32>
    %c4_i32 = arith.constant 4 : i32
    %20 = vector.broadcast %c4_i32 : i32 to vector<8x128xi32>
    %21 = arith.muli %19, %20 : vector<8x128xi32>
    %22 = arith.addi %16, %21 : vector<8x128xi32>
    %23 = vector.extract_strided_slice %7 {offsets = [16, 0], sizes = [8, 128], strides = [1, 1]} : vector<32x128xf32> to vector<8x128xf32>
    %24 = arith.mulf %18, %23 : vector<8x128xf32>
    %25 = vector.extract_strided_slice %10 {offsets = [24, 0], sizes = [8, 128], strides = [1, 1]} : vector<32x128xi32> to vector<8x128xi32>
    %c8_i32 = arith.constant 8 : i32
    %26 = vector.broadcast %c8_i32 : i32 to vector<8x128xi32>
    %27 = arith.muli %25, %26 : vector<8x128xi32>
    %28 = arith.addi %22, %27 : vector<8x128xi32>
    %29 = vector.extract_strided_slice %7 {offsets = [24, 0], sizes = [8, 128], strides = [1, 1]} : vector<32x128xf32> to vector<8x128xf32>
    %30 = arith.mulf %24, %29 : vector<8x128xf32>
    %c0_6 = arith.constant 0 : index
    %c0_7 = arith.constant 0 : index
    %31 = vector.load %arg4[%c0_6, %c0_7] : memref<8x128xi32, #tpu.memory_space<vmem>>, vector<8x128xi32>
    tpu.vector_store %arg4[%c0_6, %c0_7], %28 {strides = array<i32>} : memref<8x128xi32, #tpu.memory_space<vmem>>, vector<8x128xi32>,
    %c0_8 = arith.constant 0 : index
    %c0_9 = arith.constant 0 : index
    %32 = vector.load %arg5[%c0_8, %c0_9] : memref<8x128xf32, #tpu.memory_space<vmem>>, vector<8x128xf32>
    tpu.vector_store %arg5[%c0_8, %c0_9], %30 {strides = array<i32>} : memref<8x128xf32, #tpu.memory_space<vmem>>, vector<8x128xf32>,
    return
  }
  func.func @transform_0(%arg0: i32) -> (i32, i32) {
    %c0_i32 = arith.constant 0 : i32
    %c0_i32_0 = arith.constant 0 : i32
    return %c0_i32, %arg0 : i32, i32
  }
  func.func @transform_1(%arg0: i32) -> (i32, i32) {
    %c0_i32 = arith.constant 0 : i32
    %c0_i32_0 = arith.constant 0 : i32
    %c0_i32_1 = arith.constant 0 : i32
    return %c0_i32, %c0_i32_0 : i32, i32
  }
  func.func @transform_2(%arg0: i32) -> (i32, i32) {
    %c0_i32 = arith.constant 0 : i32
    %c0_i32_0 = arith.constant 0 : i32
    %c0_i32_1 = arith.constant 0 : i32
    return %c0_i32, %c0_i32_0 : i32, i32
  }
  func.func @transform_3(%arg0: i32) -> (i32, i32) {
    %c0_i32 = arith.constant 0 : i32
    %c0_i32_0 = arith.constant 0 : i32
    return %c0_i32, %arg0 : i32, i32
  }
  func.func @transform_4(%arg0: i32) -> (i32, i32) {
    %c0_i32 = arith.constant 0 : i32
    %c0_i32_0 = arith.constant 0 : i32
    return %c0_i32, %arg0 : i32, i32
  }
}

</mosaic_0001>

<bundles_post_ra>
// kernel: tpu_custom_call.1
= control target key start
LH: loop header
LB: loop body
LE: loop exit
PB: predicated region body
PF: predicated region fallthrough
CT: control target
= control target key end

     0   :  { %10 = vsyncpa [#allocation3], 0  ;;  %s1729_s0 = inlined_call_operand.hbm [shape: f32[32,256], index: 0, kind: input, shape index: {}]   ;;  %s1730_s1 = inlined_call_operand.vmem [shape: f32[32,32], index: 1, kind: input, shape index: {}]   ;;  %s1731_s2 = inlined_call_operand.vmem [shape: f32[32,1], index: 2, kind: input, shape index: {}]   ;;  %s1732_s3 = inlined_call_operand.hbm [shape: s32[8,256], index: 3, kind: output, shape index: {0}]   ;;  %s1733_s4 = inlined_call_operand.hbm [shape: f32[8,256], index: 4, kind: output, shape index: {1}]  }
   0x1   :  { %12 = vsyncpa [#allocation3 + $0x1], 0 }
   0x2   :  { %13 = vsyncpa [#allocation4], 0 }
   0x3   :  { %15 = vsyncpa [#allocation4 + $0x1], 0 }
   0x4   :  { %16 = vsyncpa [#allocation7], 0 }
   0x5   :  { %18 = vsyncpa [#allocation7 + $0x1], 0  ;;  %s1414_s15 = smov 0   ;;  %s1416_s16 = smov 0  }
   0x6   :  { %s1418_s17 = smov 0   ;;  %s1420_s18 = smov 0  }
   0x7 LB: > { %s1435_s19 = sadd.s32 4294967295, %s1380_s18   ;;  %s1046_s20 = sadd.s32 4294967294, %s1380_s18   ;;  %s1380_s18 = sphi %s1420_s18, %s1749_s18   ;;  %s1376_s17 = sphi %s1418_s17, %s1748_s17   ;;  %s1372_s16 = sphi %s1416_s16, %s1747_s16   ;;  %s1368_s15 = sphi %s1414_s15, %s1746_s15  }
   0x8   : > { %s1439_s21 = sadd.s32 1, %s1380_s18   ;;  %s31_s22 = sadd.s32 1, %s1376_s17 }
   0x9   : > { %s28_s23 = ssub.s32 %s1380_s18, %s1439_s21  ;;  %p38_p0 = scmp.ne.s32.totalorder %s1376_s17, %s1372_s16 }
   0xa   : > { %p29_p1 = scmp.eq.s32.totalorder %s28_s23, 0  ;;  %p39_p2 = scmp.eq.s32.totalorder %s1380_s18, 0 }
   0xb   : > { %p44_p3 = scmp.ne.s32.totalorder %s1372_s16, %s1368_s15  ;;  %p45_p4 = scmp.eq.s32.totalorder %s1435_s19, 0 }
   0xc   : > { %s1451_s24 = scalar_select %p29_p1, %s1376_s17, %s31_s22  }
   0xd   : > { %p1453_p5 = por %p39_p2, %p38_p0  ;;  %p1457_p6 = por %p45_p4, %p44_p3 }
   0xe   : > { %p110_p7 = scmp.eq.s32.totalorder %s1435_s19, 1  ;;  %p116_p8 = scmp.eq.s32.totalorder %s1046_s20, 1 }
   0xf   : > { %s1737_s26 = scalar_select %p1457_p6, 1, 0 }
  0x10   : > { %p1210_p10 = scmp.lt.s32.totalorder %s1380_s18, 2  ;;  %p1464_p11 = por %p110_p7, %p38_p0 }
  0x11   : > { %p1468_p12 = por %p116_p8, %p44_p3  ;;  %s168_s29 = sand.u32 1, %s1376_s17  }
  0x12   : > { %s1738_s27 = scalar_select %p1464_p11, 1, 0 }
  0x13   : > { %s1739_s28 = scalar_select %p1468_p12, 1, 0 }
  0x14   : > { %s1050_s30 = sshll.u32 %s1380_s18, 7  ;;  %s1049_s5 = sshll.u32 %s168_s29, 5 }
  0x15   : > { %s1477_s8 = scalar_lea.hbm %s1729_s0, %s1050_s30  ;;  %s172_s9 = scalar_lea.vmem [#allocation2], %s1049_s5 }
  0x16   : > { %s178_s10 = sshll.u32 %s172_s9, 4  ;;  %p1481_p13 = pnand %p1210_p10, %p1453_p5  ;;  %s1485_s10 = int_to_ptr.vmem [resolvable:$true] %s178_s10 }
  0x17   : > { %s1488_s12 = scalar_lea.sflag [#allocation3], %s168_s29  ;;  %s1258_s13 = scalar_lea.hbm %s1477_s8, 512 }
  0x18   : > { %p1259_p1 = scmp.ne.s32.totalorder %s1477_s8, %s1258_s13  ;;  %p1260_p2 = pneg %p1481_p13 }
  0x19   : > { %s1263_s22 = scalar_lea.hbm %s1729_s0, 1024  ;;  %p1264_p5 = scmp.lt.s32.totalorder %s1477_s8, %s1729_s0 }
  0x1a   : > { %p1261_p3 = pnand %p1260_p2, %p1259_p1  ;;  %p1265_p7 = scmp.lt.s32.totalorder %s1263_s22, %s1258_s13 }
  0x1c   : > { %p1262_p4 = pneg %p1261_p3  ;;  %p1266_p8 = por %p1265_p7, %p1264_p5 }
  0x1e   : > { %p1267_p10 = pnand %p1266_p8, %p1262_p4 }
  0x20   : > { %1270 = shalt.err (!%p1267_p10)
}
  0x21   : > { %s1271_s29 = scalar_lea.vmem %s1485_s10, 512  ;;  %s1382_s30 = smov [#allocation2]  }
  0x22   : > { %p1272_p9 = scmp.ne.s32.totalorder %s1485_s10, %s1271_s29  ;;  %s1276_s5 = sshll.u32 %s1382_s30, 4  ;;  %s1277_s5 = int_to_ptr.vmem [resolvable:$false] %s1276_s5 }
  0x23   : > { %s1278_s6 = scalar_lea.vmem %s1277_s5, 1024  ;;  %p1279_p3 = scmp.lt.s32.totalorder %s1485_s10, %s1277_s5 }
  0x24   : > { %p1274_p0 = pnand %p1272_p9, %p1260_p2  ;;  %p1280_p12 = scmp.lt.s32.totalorder %s1278_s6, %s1271_s29 }
  0x26   : > { %p1275_p1 = pneg %p1274_p0  ;;  %p1281_p11 = por %p1280_p12, %p1279_p3 }
  0x28   : > { %p1282_p6 = pnand %p1281_p11, %p1275_p1 }
  0x2a   : > { %1285 = shalt.err (!%p1282_p6)
}
  0x2b   : > { %s1383_s7 = smov 256   ;;  %s1384_s9 = smov 128  }
  0x2c   : > { %s1385_s13 = smov 8   ;;  %p186_p9 = scmp.lt.s32.totalorder %s1380_s18, 3 }
  0x2d   : > { %1202 = dma.hbm_to_vmem [thread:$0]  (!%p1481_p13), %s1477_s8, 512, %s1485_s10, %s1488_s12, %s1383_s7, %s1384_s9, %s1385_s13  }
  0x2e   : > { %p1741_p0 = scmp.ge.s32.totalorder %s1380_s18, 1 }
  0x30   : > { %p187_p2 = pnand %p1741_p0, %p186_p9 }
  0x31   : > { %s1513_s14 = sand.u32 (!%p187_p2), 1, %s1372_s16   ;;  %p1742_p6 = scmp.ne.s32.totalorder (!%p187_p2), %s1737_s26, 0 }
  0x32   : > { %190 = sbr.rel (%p187_p2) target bundleno = 344 (0x158), region = 32  ;;  %s1052_s20 = sshll.u32 (!%p187_p2), %s1513_s14, 5 }
  0x33   : > { %s193_s22 = scalar_lea.sflag (!%p187_p2), [#allocation3], %s1513_s14  ;;  %s196_s23 = scalar_lea.vmem (!%p187_p2), [#allocation2], %s1052_s20 }
  0x37   : > { %1355 = dma.done.wait (%p1742_p6), %s193_s22, 512  }
  0x38   : > { %1357 = vsyncadd (%p1742_p6), %s193_s22, 4294966784  ;;  %v1386_v0 = vmov 0   ;;  %vm258_vm0 = vcmask 261120   ;;  %v233_v1 = vld [vmem:[%s196_s23 + $0x18] sm:$0xff]  ;;  %v232_v2 = vld [vmem:[%s196_s23 + $0x10] sm:$0xff]  ;;  %s1053_s8 = sshll.u32 %s1513_s14, 3 }
  0x39   : > { %1248 = vset.pattern.permute.xlu0 %v1386_v0  ;;  %1249 = vset.pattern.permute.xlu1 %v1386_v0  ;;  %v231_v3 = vld [vmem:[%s196_s23 + $0x8] sm:$0xff]  ;;  %v1523_v4 = vand.u32 4294901760, %v233_v1  ;;  %v1525_v5 = vand.u32 4294901760, %v232_v2  ;;  %v230_v7 = vld [vmem:[%s196_s23] sm:$0xff]  ;;  %v228_v13 = vld [vmem:[%s1730_s1 + $0x10] sm:$0xff]  ;;  %s1057_s10 = sshll.u32 %s1435_s19, 7 }
  0x3a   : > { %v1527_v6 = vand.u32 4294901760, %v231_v3  ;;  %v226_v8 = vld [vmem:[%s1730_s1] sm:$0xff]  ;;  %v227_v9 = vld [vmem:[%s1730_s1 + $0x8] sm:$0xff]  ;;  %v1535_v10 = vand.u32 4294901760, %v230_v7  ;;  %v229_v14 = vld [vmem:[%s1730_s1 + $0x18] sm:$0xff]  ;;  %v266_v22 = vsel %vm258_vm0, %v228_v13, 0  ;;  %s929_s29 = scalar_lea.hbm %s1732_s3, %s1057_s10 }
  0x3b   : > { %v260_v11 = vsel %vm258_vm0, %v226_v8, 0  ;;  %v263_v12 = vsel %vm258_vm0, %v227_v9, 0  ;;  %v234_v15 = vld [vmem:[%s1731_s2] sm:$0xff]  ;;  %1109 = vmatprep.subr.mxu0 %v1523_v4  ;;  %v406_v16 = vsub.f32 %v233_v1, %v1523_v4  ;;  %v413_v19 = vsub.f32 %v232_v2, %v1525_v5  ;;  %v236_v20 = vld [vmem:[%s1731_s2 + $0x10] sm:$0xff]  ;;  %v235_v25 = vld [vmem:[%s1731_s2 + $0x8] sm:$0xff]  ;;  %s218_s26 = scalar_lea.vmem [#allocation5], %s1053_s8 }
  0x3c   : > { %v1550_v17 = vand.u32 4294901760, %v260_v11  ;;  %v1552_v18 = vand.u32 4294901760, %v263_v12  ;;  %240 = vperm.xlu0 %1248, %v234_v15   ;;  %1110 = vmatpush3.msra.mxu0 %v1523_v4  ;;  %v420_v21 = vsub.f32 %v231_v3, %v1527_v6  ;;  %v269_v23 = vsel %vm258_vm0, %v229_v14, 0  ;;  %v237_v34 = vld [vmem:[%s1731_s2 + $0x18] sm:$0xff]  ;;  %s931_s11 = sshll.u32 %s218_s26, 4  ;;  %s913_s30 = scalar_lea.sflag [#allocation4], %s1513_s14  ;;  %s932_s11 = int_to_ptr.vmem [resolvable:$true] %s931_s11 }
  0x3d   : > { %v1563_v24 = vsub.f32 %v230_v7, %v1535_v10  ;;  %250 = vperm.xlu1 %1249, %v236_v20   ;;  %1111 = vmatprep.subr.mxu0 %v1525_v5  ;;  %v1569_v26 = vand.u32 4294901760, %v406_v16  ;;  %v1577_v29 = vand.u32 4294901760, %v413_v19  ;;  %v1583_v31 = vand.u32 4294901760, %v266_v22  ;;  %s1286_s5 = scalar_lea.vmem %s932_s11, 128  ;;  %p1743_p12 = scmp.ne.s32.totalorder %s1738_s27, 0 }
  0x3e   : > { %v1572_v27 = vsub.f32 %v260_v11, %v1550_v17  ;;  %v1575_v28 = vsub.f32 %v263_v12, %v1552_v18  ;;  %1131 = vmatprep.mubr.f32.mxu1 %v1550_v17  ;;  %1112 = vmatpush3.msra.mxu0 %v1525_v5  ;;  %v1581_v30 = vand.u32 4294901760, %v420_v21  ;;  %v1585_v32 = vand.u32 4294901760, %v269_v23  ;;  %p1287_p11 = scmp.ne.s32.totalorder %s932_s11, %s1286_s5  ;;  %s1387_s6 = smov [#allocation5]  }
  0x3f   : > { %v1588_v33 = vand.u32 4294901760, %v1563_v24  ;;  %1113 = vmatprep.subr.mxu0 %v1527_v6  ;;  %v408_v35 = vsub.f32 %v406_v16, %v1569_v26  ;;  %v415_v38 = vsub.f32 %v413_v19, %v1577_v29  ;;  %v1601_v40 = vsub.f32 %v266_v22, %v1583_v31  ;;  %s1290_s7 = sshll.u32 %s1387_s6, 4  ;;  %s1291_s7 = int_to_ptr.vmem [resolvable:$false] %s1290_s7 }
  0x40   : > { %v342_v36 = vand.u32 4294901760, %v1572_v27  ;;  %v352_v37 = vand.u32 4294901760, %v1575_v28  ;;  %245 = vperm.xlu0 %1248, %v235_v25   ;;  %1114 = vmatpush3.msra.mxu0 %v1527_v6  ;;  %v422_v39 = vsub.f32 %v420_v21, %v1581_v30  ;;  %v1604_v41 = vsub.f32 %v269_v23, %v1585_v32  ;;  %p1288_p13 = pnand %p1287_p11, %p1743_p12  ;;  %s1292_s9 = scalar_lea.vmem %s1291_s7, 256 }
  0x41   : > { %1115 = vmatprep.subr.mxu0 %v1535_v10  ;;  %v409_v42 = vand.u32 4294901760, %v408_v35  ;;  %v416_v45 = vand.u32 4294901760, %v415_v38  ;;  %255 = vperm.xlu1 %1249, %v237_v34   ;;  %v362_v46 = vand.u32 4294901760, %v1601_v40  ;;  %v429_v48 = vsub.f32 %v1563_v24, %v1588_v33  ;;  %p1293_p5 = scmp.lt.s32.totalorder %s932_s11, %s1291_s7  ;;  %p1294_p7 = scmp.lt.s32.totalorder %s1292_s9, %s1286_s5 }
  0x42   : > { %v343_v43 = vsub.f32 %v1572_v27, %v342_v36  ;;  %v353_v44 = vsub.f32 %v1575_v28, %v352_v37  ;;  %1116 = vmatpush3.msra.mxu0 %v1535_v10  ;;  %v372_v47 = vand.u32 4294901760, %v1604_v41  ;;  %v423_v51 = vand.u32 4294901760, %v422_v39  ;;  %p1289_p4 = pneg %p1288_p13 }
  0x43   : > { %1123 = vmatprep.subr.mxu1 %v409_v42  ;;  %1137 = vmatprep.subr.mxu0 %v406_v16  ;;  %v363_v52 = vsub.f32 %v1601_v40, %v362_v46  ;;  %v430_v56 = vand.u32 4294901760, %v429_v48  ;;  %p1295_p8 = por %p1294_p7, %p1293_p5 }
  0x44   : > { %v344_v49 = vand.u32 4294901760, %v343_v43  ;;  %v354_v50 = vand.u32 4294901760, %v353_v44  ;;  %1124 = vmatpush3.msra.mxu1 %v409_v42  ;;  %v373_v53 = vsub.f32 %v1604_v41, %v372_v47 }
  0x45   : > { %1125 = vmatprep.subr.mxu1 %v416_v45  ;;  %v364_v54 = vand.u32 4294901760, %v363_v52  ;;  %p1296_p10 = pnand %p1295_p8, %p1289_p4 }
  0x46   : > { %1117 = vmatprep.mubr.f32.mxu0 %v344_v49  ;;  %1126 = vmatpush3.msra.mxu1 %v416_v45  ;;  %v374_v55 = vand.u32 4294901760, %v373_v53 }
  0x47   : > { %1118 = vmatmul.mubr.f32.vlgmr.msra.gmra.mxu0 %v354_v50  ;;  %1127 = vmatprep.subr.mxu1 %v423_v51 }
  0x48   : > { %1138 = vmatpush3.msra.mxu0 %v406_v16  ;;  %1120 = vmatprep.mubr.f32.mxu0 %v364_v54 }
  0x49   : > { %1139 = vmatprep.subr.mxu0 %v413_v19  ;;  %1128 = vmatpush3.msra.mxu1 %v423_v51 }
  0x4a   : > { %1140 = vmatpush3.msra.mxu0 %v413_v19  ;;  %1129 = vmatprep.subr.mxu1 %v430_v56 }
  0x4b   : > { %1121 = vmatmul.mubr.f32.gmra.mxu0 %v374_v55  ;;  %1141 = vmatprep.subr.mxu0 %v420_v21 }
  0x4c   : > { %1130 = vmatpush3.msra.mxu1 %v430_v56  ;;  %1142 = vmatpush3.msra.mxu0 %v420_v21 }
  0x4d   : > { %1132 = vmatmul.mubr.f32.vlgmr.msra.gmra.mxu1 %v1552_v18  ;;  %1143 = vmatprep.subr.mxu0 %v1563_v24 }
  0x4e   : > { %1151 = vmatprep.subr.mxu1 %v1523_v4  ;;  %1144 = vmatpush3.msra.mxu0 %v1563_v24 }
  0x4f   : > { %1145 = vmatprep.mubr.f32.mxu0 %v1572_v27  ;;  %1152 = vmatpush3.msra.mxu1 %v1523_v4 }
  0x50   : > { %1146 = vmatmul.mubr.f32.vlgmr.msra.gmra.mxu0 %v1575_v28  ;;  %1153 = vmatprep.subr.mxu1 %v1525_v5 }
  0x51   : > { %1165 = vmatprep.subr.mxu0 %v1569_v26  ;;  %1134 = vmatprep.mubr.f32.mxu1 %v1583_v31 }
  0x52   : > { %1154 = vmatpush3.msra.mxu1 %v1525_v5  ;;  %1166 = vmatpush3.msra.mxu0 %v1569_v26 }
  0x53   : > { %1135 = vmatmul.mubr.f32.gmra.mxu1 %v1585_v32  ;;  %1155 = vmatprep.subr.mxu1 %v1527_v6 }
  0x54   : > { %1167 = vmatprep.subr.mxu0 %v1577_v29  ;;  %1148 = vmatprep.mubr.f32.mxu0 %v1601_v40 }
  0x55   : > { %1156 = vmatpush3.msra.mxu1 %v1527_v6  ;;  %1168 = vmatpush3.msra.mxu0 %v1577_v29 }
  0x56   : > { %1157 = vmatprep.subr.mxu1 %v1535_v10  ;;  %1149 = vmatmul.mubr.f32.gmra.mxu0 %v1604_v41 }
  0x57   : > { %1169 = vmatprep.subr.mxu0 %v1581_v30  ;;  %1158 = vmatpush3.msra.mxu1 %v1535_v10 }
  0x58   : > { %1159 = vmatprep.mubr.f32.mxu1 %v342_v36  ;;  %1170 = vmatpush3.msra.mxu0 %v1581_v30 }
  0x59   : > { %1160 = vmatmul.mubr.f32.vlgmr.msra.gmra.mxu1 %v352_v37  ;;  %1171 = vmatprep.subr.mxu0 %v1588_v33 }
  0x5a   : > { %1179 = vmatprep.subr.mxu1 %v1523_v4  ;;  %1172 = vmatpush3.msra.mxu0 %v1588_v33 }
  0x5b   : > { %1173 = vmatprep.mubr.f32.mxu0 %v1550_v17  ;;  %1180 = vmatpush3.msra.mxu1 %v1523_v4 }
  0x5c   : > { %1174 = vmatmul.mubr.f32.vlgmr.msra.gmra.mxu0 %v1552_v18  ;;  %1181 = vmatprep.subr.mxu1 %v1525_v5 }
  0x5d   : > { %1162 = vmatprep.mubr.f32.mxu1 %v362_v46  ;;  %1182 = vmatpush3.msra.mxu1 %v1525_v5 }
  0x5e   : > { %1176 = vmatprep.mubr.f32.mxu0 %v1583_v31  ;;  %1163 = vmatmul.mubr.f32.gmra.mxu1 %v372_v47 }
  0x5f   : > { %1183 = vmatprep.subr.mxu1 %v1527_v6  ;;  %1187 = vmatprep.mubr.f32.mxu1 %v1550_v17 }
  0x60   : > { %1184 = vmatpush3.msra.mxu1 %v1527_v6  ;;  %1177 = vmatmul.mubr.f32.gmra.mxu0 %v1585_v32 }
  0x61   : > { %1185 = vmatprep.subr.mxu1 %v1535_v10 }
  0x62   : > { %1186 = vmatpush3.msra.mxu1 %v1535_v10 }
  0x63   : > { %1188 = vmatmul.mubr.f32.vlgmr.msra.gmra.mxu1 %v1552_v18 }
  0x64   : > { %1190 = vmatprep.mubr.f32.mxu1 %v1583_v31 }
  0x67   : > { %1191 = vmatmul.mubr.f32.gmra.mxu1 %v1585_v32 }
  0xb7   : > { %v241_v59 = vpop.permute.xlu0 %240 }
  0xb8   : > { %v251_v1 = vpop.permute.xlu1 %250 }
  0xbb   : > { %v246_v3 = vpop.permute.xlu0 %245 }
  0xbc   : > { %v256_v8 = vpop.permute.xlu1 %255 }
 0x107   : > { %v1119_v57 = vpop.f32.mrf.mxu0 }
 0x108   : > { %v357_v6 = vadd.f32 %v1119_v57, %v246_v3 }
 0x109   : > { %v346_v58 = vpop.f32.mrf.mxu0 }
 0x10a   : > { %v347_v10 = vadd.f32 %v346_v58, %v241_v59 }
 0x10b   : > { %v1122_v60 = vpop.f32.mrf.mxu0 }
 0x10c   : > { %v377_v12 = vadd.f32 %v1122_v60, %v256_v8 }
 0x10d   : > { %v366_v61 = vpop.f32.mrf.mxu0  ;;  %v1133_v62 = vpop.f32.mrf.mxu1 }
 0x10e   : > { %v474_v11 = vadd.f32 %v1133_v62, %v357_v6  ;;  %v367_v17 = vadd.f32 %v366_v61, %v251_v1 }
 0x10f   : > { %v467_v63 = vpop.f32.mrf.mxu1 }
 0x110   : > { %v1147_v2 = vpop.f32.mrf.mxu0  ;;  %v468_v15 = vadd.f32 %v467_v63, %v347_v10 }
 0x111   : > { %v573_v18 = vadd.f32 %v1147_v2, %v474_v11 }
 0x112   : > { %v565_v5 = vpop.f32.mrf.mxu0 }
 0x113   : > { %v1136_v4 = vpop.f32.mrf.mxu1  ;;  %v566_v21 = vadd.f32 %v565_v5, %v468_v15 }
 0x114   : > { %v486_v20 = vadd.f32 %v1136_v4, %v377_v12 }
 0x115   : > { %v479_v7 = vpop.f32.mrf.mxu1 }
 0x116   : > { %v1150_v9 = vpop.f32.mrf.mxu0  ;;  %v480_v22 = vadd.f32 %v479_v7, %v367_v17 }
 0x117   : > { %v587_v27 = vadd.f32 %v1150_v9, %v486_v20 }
 0x118   : > { %v579_v13 = vpop.f32.mrf.mxu0 }
 0x119   : > { %v1161_v14 = vpop.f32.mrf.mxu1  ;;  %v580_v30 = vadd.f32 %v579_v13, %v480_v22 }
 0x11a   : > { %v672_v23 = vadd.f32 %v1161_v14, %v573_v18 }
 0x11b   : > { %v663_v16 = vpop.f32.mrf.mxu1 }
 0x11c   : > { %v1175_v19 = vpop.f32.mrf.mxu0  ;;  %v664_v26 = vadd.f32 %v663_v16, %v566_v21 }
 0x11d   : > { %v777_v31 = vadd.f32 %v1175_v19, %v672_v23 }
 0x11e   : > { %v770_v24 = vpop.f32.mrf.mxu0  ;;  %v1164_v25 = vpop.f32.mrf.mxu1 }
 0x11f   : > { %v688_v32 = vadd.f32 %v1164_v25, %v587_v27  ;;  %v771_v34 = vadd.f32 %v770_v24, %v664_v26 }
 0x120   : > { %v679_v28 = vpop.f32.mrf.mxu1  ;;  %v1178_v29 = vpop.f32.mrf.mxu0 }
 0x121   : > { %v680_v35 = vadd.f32 %v679_v28, %v580_v30  ;;  %v789_v40 = vadd.f32 %v1178_v29, %v688_v32 }
 0x122   : > { %v782_v37 = vpop.f32.mrf.mxu0 }
 0x123   : > { %v1189_v33 = vpop.f32.mrf.mxu1  ;;  %v783_v43 = vadd.f32 %v782_v37, %v680_v35 }
 0x124   : > { %v870_v36 = vadd.f32 %v1189_v33, %v777_v31 }
 0x125   : > { %v863_v38 = vpop.f32.mrf.mxu1 }
 0x126   : > { %vm894_vm1 = vcmp.gt.f32.partialorder %v870_v36, 0.0  ;;  %v864_v39 = vadd.f32 %v863_v38, %v771_v34  ;;  %v886_v44 = vand.u32 2147483647, %v870_v36 }
 0x127   : > { %v898_v41 = vsel %vm894_vm1, 1, %v1386_v0  ;;  %v1192_v42 = vpop.f32.mrf.mxu1 }
 0x128   : > { %v885_v45 = vand.u32 2147483647, %v864_v39  ;;  %vm893_vm2 = vcmp.gt.f32.partialorder %v864_v39, 0.0  ;;  %v882_v46 = vadd.f32 %v1192_v42, %v789_v40  ;;  %v901_v48 = vmul.u32 2, %v898_v41 }
 0x129   : > { %v875_v47 = vpop.f32.mrf.mxu1  ;;  %v897_v50 = vsel %vm893_vm2, 1, %v1386_v0 }
 0x12a   : > { %1250 = vtanh.f32 %v885_v45  ;;  %v876_v49 = vadd.f32 %v875_v47, %v783_v43  ;;  %vm896_vm3 = vcmp.gt.f32.partialorder %v882_v46, 0.0  ;;  %v888_v51 = vand.u32 2147483647, %v882_v46 }
 0x12b   : > { %1252 = vtanh.f32 %v886_v44  ;;  %v900_v53 = vsel %vm896_vm3, 1, %v1386_v0  ;;  %v902_v55 = vadd.s32 %v901_v48, %v897_v50 }
 0x12c   : > { %v887_v52 = vand.u32 2147483647, %v876_v49  ;;  %vm895_vm4 = vcmp.gt.f32.partialorder %v876_v49, 0.0  ;;  %v907_v57 = vmul.u32 8, %v900_v53 }
 0x12d   : > { %v899_v54 = vsel %vm895_vm4, 1, %v1386_v0 }
 0x12e   : > { %1254 = vtanh.f32 %v887_v52  ;;  %v904_v56 = vmul.u32 4, %v899_v54 }
 0x12f   : > { %1256 = vtanh.f32 %v888_v51 }
 0x130   : > { %v905_v58 = vadd.s32 %v904_v56, %v902_v55 }
 0x132   : > { %v908_v59 = vadd.s32 %v907_v57, %v905_v58 }
 0x134   : > { %910 = vst [vmem:[%s218_s26] sm:$0xff] %v908_v59 }
 0x135   : > { %1299 = shalt.err (!%p1296_p10)
}
 0x136   : > { %s1300_s13 = scalar_lea.hbm %s929_s29, 128  ;;  %s1304_s23 = scalar_lea.hbm %s1732_s3, 256 }
 0x137   : > { %p1301_p1 = scmp.ne.s32.totalorder %s929_s29, %s1300_s13  ;;  %p1305_p0 = scmp.lt.s32.totalorder %s929_s29, %s1732_s3 }
 0x138   : > { %p1306_p2 = scmp.lt.s32.totalorder %s1304_s23, %s1300_s13 }
 0x139   : > { %p1302_p3 = pnand %p1301_p1, %p1743_p12 }
 0x13a   : > { %p1307_p6 = por %p1306_p2, %p1305_p0 }
 0x13b   : > { %p1303_p9 = pneg %p1302_p3 }
 0x13d   : > { %p1308_p11 = pnand %p1307_p6, %p1303_p9 }
 0x13f   : > { %1311 = shalt.err (!%p1308_p11)
}
 0x140   : > { %1195 = dma.vmem_to_hbm [thread:$0]  (%p1743_p12), %s932_s11, 128, %s929_s29, %s913_s30   ;;  %v1251_v0 = vpop.eup %1250 }
 0x141   : > { %v1253_v60 = vpop.eup %1252  ;;  %s225_s25 = scalar_lea.vmem [#allocation6], %s1053_s8  ;;  %s942_s9 = scalar_lea.hbm %s1733_s4, %s1057_s10 }
 0x142   : > { %v903_v61 = vmul.f32 %v1253_v60, %v1251_v0  ;;  %v1255_v62 = vpop.eup %1254  ;;  %s944_s5 = sshll.u32 %s225_s25, 4  ;;  %s918_s13 = scalar_lea.sflag [#allocation7], %s1513_s14  ;;  %s945_s5 = int_to_ptr.vmem [resolvable:$true] %s944_s5 }
 0x143   : > { %v1257_v1 = vpop.eup %1256  ;;  %s1312_s11 = scalar_lea.vmem %s945_s5, 128  ;;  %s1388_s29 = smov [#allocation6]  }
 0x144   : > { %v906_v63 = vmul.f32 %v1255_v62, %v903_v61  ;;  %p1313_p13 = scmp.ne.s32.totalorder %s945_s5, %s1312_s11  ;;  %s1316_s30 = sshll.u32 %s1388_s29, 4  ;;  %s1317_s30 = int_to_ptr.vmem [resolvable:$false] %s1316_s30 }
 0x145   : > { %s1318_s8 = scalar_lea.vmem %s1317_s30, 256  ;;  %p1319_p7 = scmp.lt.s32.totalorder %s945_s5, %s1317_s30 }
 0x146   : > { %v909_v2 = vmul.f32 %v1257_v1, %v906_v63  ;;  %p1314_p4 = pnand %p1313_p13, %p1743_p12  ;;  %p1320_p8 = scmp.lt.s32.totalorder %s1318_s8, %s1312_s11 }
 0x148   : > { %911 = vst [vmem:[%s225_s25] sm:$0xff] %v909_v2  ;;  %p1315_p5 = pneg %p1314_p4  ;;  %p1321_p10 = por %p1320_p8, %p1319_p7 }
 0x14a   : > { %p1322_p1 = pnand %p1321_p10, %p1315_p5 }
 0x14c   : > { %1325 = shalt.err (!%p1322_p1)
}
 0x14d   : > { %s1326_s19 = scalar_lea.hbm %s942_s9, 128  ;;  %s1330_s20 = scalar_lea.hbm %s1733_s4, 256 }
 0x14e   : > { %p1327_p3 = scmp.ne.s32.totalorder %s942_s9, %s1326_s19  ;;  %p1331_p2 = scmp.lt.s32.totalorder %s942_s9, %s1733_s4 }
 0x14f   : > { %p1332_p6 = scmp.lt.s32.totalorder %s1330_s20, %s1326_s19 }
 0x150   : > { %p1328_p9 = pnand %p1327_p3, %p1743_p12 }
 0x151   : > { %p1333_p11 = por %p1332_p6, %p1331_p2 }
 0x152   : > { %p1329_p0 = pneg %p1328_p9 }
 0x154   : > { %p1334_p13 = pnand %p1333_p11, %p1329_p0 }
 0x156   : > { %1337 = shalt.err (!%p1334_p13)
}
 0x157   : > { %1196 = dma.vmem_to_hbm [thread:$0]  (%p1743_p12), %s945_s5, 128, %s942_s9, %s918_s13  }
 0x158 PF: > { %s956_s26 = sand.u32 1, %s1368_s15   ;;  %p1744_p4 = scmp.ne.s32.totalorder %s1739_s28, 0 }
 0x159   : > { %p1745_p5 = scmp.ge.s32.totalorder %s1380_s18, 2  ;;  %s957_s12 = scalar_lea.sflag [#allocation4], %s956_s26 }
 0x15b   : > { %p1204_p7 = pnand %p1745_p5, %p1744_p4 }
 0x15d   : > { %p1205_p8 = pneg %p1204_p7 }
 0x15f   : > { %1359 = dma.done.wait (%p1205_p8), %s957_s12, 128  }
 0x160   : > { %1361 = vsyncadd (%p1205_p8), %s957_s12, 4294967168  ;;  %s966_s25 = scalar_lea.sflag [#allocation7], %s956_s26 }
 0x161   : > { %1363 = dma.done.wait (%p1205_p8), %s966_s25, 128  }
 0x162   : > { %1365 = vsyncadd (%p1205_p8), %s966_s25, 4294967168  ;;  %p21_p12 = scmp.ge.s32.totalorder %s1439_s21, 4   ;;  %s1746_s15 = smov %s1372_s16 }
 0x163   : > { %s1747_s16 = smov %s1376_s17  ;;  %s1748_s17 = smov %s1451_s24 }
 0x164   : > { %s1749_s18 = smov %s1439_s21  ;;  %23 = sbr.rel (!%p21_p12) target bundleno = 7 (0x7), region = 94 }
 0x169   :  { %971 = vsyncpa [#allocation3], 1 }
 0x16a   :  { %973 = vsyncpa [#allocation3 + $0x1], 1 }
 0x16b   :  { %974 = vsyncpa [#allocation4], 1 }
 0x16c   :  { %976 = vsyncpa [#allocation4 + $0x1], 1 }
 0x16d   :  { %977 = vsyncpa [#allocation7], 1 }
 0x16e   :  { %979 = vsyncpa [#allocation7 + $0x1], 1 }

</bundles_post_ra>
